<compile_context>
chip_gen: v7x
topology: tpu7x:2x2x1
jax: 0.10.0
libtpu: 0.0.40
codegen_flags: <defaults>
</compile_context>

<pallas_src>
import functools
import jax
import jax.numpy as jnp
from jax import lax
from jax.experimental import pallas as pl
from jax.experimental.pallas import tpu as pltpu

EPS = 1e-5


def _vmem_limit_bytes():
    # ~75% of physical VMEM, capped at 100 MiB:
    # v5e/v6e (128 MiB) -> ~96-100 MiB, v7x (64 MiB) -> ~48 MiB.
    try:
        cap = pltpu.get_tpu_info().vmem_capacity_bytes
    except Exception:
        cap = 64 * 1024 * 1024
    return min(int(cap * 3 // 4), 100 * 1024 * 1024)


VMEM_LIMIT = _vmem_limit_bytes()


# ------------------------------ tiling helpers -------------------------------

def _pick_tile(dim, target, align):
    """Largest tile <= target that divides dim and is a multiple of align,
    else the full dim (a block equal to the full array dim is always legal)."""
    if dim <= target:
        return dim
    t = (target // align) * align
    while t >= align:
        if dim % t == 0:
            return t
        t -= align
    return dim


def _row_tile(dim, target=512):      # sublane-dim tiles: multiple of 8
    return _pick_tile(dim, target, 8)


def _lane_tile(dim, target=512):     # lane-dim tiles: multiple of 128
    return _pick_tile(dim, target, 128)


def _cparams(dims):
    return pltpu.CompilerParams(dimension_semantics=dims,
                                vmem_limit_bytes=VMEM_LIMIT)


def _apply_norm(x, gamma, use_rms):
    """LayerNorm / RMSNorm over last axis (f32 math, weight-only, no bias)."""
    if use_rms:
        ms = jnp.mean(x * x, axis=-1, keepdims=True)
        y = x * lax.rsqrt(ms + EPS)
    else:
        mu = jnp.mean(x, axis=-1, keepdims=True)
        xc = x - mu
        var = jnp.mean(xc * xc, axis=-1, keepdims=True)
        y = xc * lax.rsqrt(var + EPS)
    return y * gamma


# ----------------------------- Pallas kernels --------------------------------

def _norm_kernel(x_ref, g_ref, o_ref, *, use_rms):
    x = x_ref[...].astype(jnp.float32)
    g = g_ref[...].astype(jnp.float32)
    o_ref[...] = _apply_norm(x, g, use_rms).astype(o_ref.dtype)


def norm_rows(x, gamma, use_rms):
    """Row-tiled LayerNorm/RMSNorm, x:[M, D]."""
    M, D = x.shape
    tm = _row_tile(M)
    g2 = gamma.reshape(1, D)
    return pl.pallas_call(
        functools.partial(_norm_kernel, use_rms=use_rms),
        out_shape=jax.ShapeDtypeStruct((M, D), x.dtype),
        grid=(M // tm,),
        in_specs=[pl.BlockSpec((tm, D), lambda i: (i, 0)),
                  pl.BlockSpec((1, D), lambda i: (0, 0))],
        out_specs=pl.BlockSpec((tm, D), lambda i: (i, 0)),
        compiler_params=_cparams(("parallel",)),
    )(x, g2)


def _ln_qkv_kernel(x_ref, g_ref, w_ref, o_ref, xn_sc, *, use_rms):
    # LayerNorm prologue computed once per row tile (t == 0), cached in VMEM,
    # then one wide (tm, D) @ (D, H*dh) matmul per q/k/v slab.
    t = pl.program_id(2)

    @pl.when(t == 0)
    def _():
        xn = _apply_norm(x_ref[0].astype(jnp.float32),
                         g_ref[...].astype(jnp.float32), use_rms)
        xn_sc[...] = xn.astype(xn_sc.dtype)

    y = jnp.dot(xn_sc[...], w_ref[0], preferred_element_type=jnp.float32)
    o_ref[0, 0] = y.astype(o_ref.dtype)


def ln_qkv_proj(x, gamma, w_qkv, use_rms):
    """x:[B,S,D], w_qkv:[3,D,H*dh] -> qkv:[B,3,S,H*dh] lane-dense, fused pre-LN."""
    B, S, D = x.shape
    _, _, Hd = w_qkv.shape
    tm = _row_tile(S)
    g2 = gamma.reshape(1, D)
    return pl.pallas_call(
        functools.partial(_ln_qkv_kernel, use_rms=use_rms),
        out_shape=jax.ShapeDtypeStruct((B, 3, S, Hd), x.dtype),
        grid=(B, S // tm, 3),
        in_specs=[
            pl.BlockSpec((1, tm, D), lambda b, i, t: (b, i, 0)),
            pl.BlockSpec((1, D), lambda b, i, t: (0, 0)),
            pl.BlockSpec((1, D, Hd), lambda b, i, t: (t, 0, 0)),
        ],
        out_specs=pl.BlockSpec((1, 1, tm, Hd), lambda b, i, t: (b, t, i, 0)),
        scratch_shapes=[pltpu.VMEM((tm, D), x.dtype)],
        compiler_params=_cparams(("parallel", "parallel", "arbitrary")),
    )(x, g2, w_qkv)


def _attn_kernel(q_ref, k_ref, v_ref, wo_ref, res_ref, o_ref,
                 m_sc, l_sc, acc_sc, *, scale, n_heads, d_head):
    ki = pl.program_id(2)
    last_ki = pl.num_programs(2) - 1

    @pl.when(ki == 0)
    def _():
        m_sc[...] = jnp.full(m_sc.shape, -jnp.inf, jnp.float32)
        l_sc[...] = jnp.zeros_like(l_sc)
        acc_sc[...] = jnp.zeros_like(acc_sc)

    q_all = q_ref[0, 0]                     # (tq, H*dh) bf16, lane-dense
    k_all = k_ref[0, 0]                     # (tk, H*dh) bf16
    v_all = v_ref[0, 0]                     # (tk, H*dh) bf16

    for h in range(n_heads):                # static unroll over heads
        sl = slice(h * d_head, (h + 1) * d_head)
        q = q_all[:, sl]
        k = k_all[:, sl]
        v = v_all[:, sl]
        s = lax.dot_general(q, k, (((1,), (1,)), ((), ())),
                            preferred_element_type=jnp.float32) * scale
        m_prev = m_sc[:, h:h + 1]
        m_new = jnp.maximum(m_prev, jnp.max(s, axis=-1, keepdims=True))
        alpha = jnp.exp(m_prev - m_new)
        p = jnp.exp(s - m_new)
        l_sc[:, h:h + 1] = alpha * l_sc[:, h:h + 1] + jnp.sum(p, axis=-1,
                                                              keepdims=True)
        acc_sc[:, sl] = alpha * acc_sc[:, sl] + jnp.dot(
            p.astype(v.dtype), v, preferred_element_type=jnp.float32)
        m_sc[:, h:h + 1] = m_new

    @pl.when(ki == last_ki)
    def _():
        # normalize each head, then ONE (tq, H*dh) @ (H*dh, D) out-projection
        # (K = H*dh fills the MXU) fused with the residual add.
        for h in range(n_heads):
            sl = slice(h * d_head, (h + 1) * d_head)
            inv = pl.reciprocal(l_sc[:, h:h + 1], approx=True)
            acc_sc[:, sl] = acc_sc[:, sl] * inv
        ctx = acc_sc[...].astype(wo_ref.dtype)
        out = jnp.dot(ctx, wo_ref[...], preferred_element_type=jnp.float32)
        o_ref[0] = (out + res_ref[0].astype(jnp.float32)).astype(o_ref.dtype)


def attention_block(qkv, w_o, x_res, n_heads, d_qkv):
    """Flash-blocked multi-head attention fused with out-projection + residual.

    qkv:[B,3,S,H*dh] (lane-dense), w_o:[H*dh,D], x_res:[B,S,D] -> [B,S,D].
    """
    B, _, S, Hd = qkv.shape
    D = x_res.shape[-1]
    assert Hd == n_heads * d_qkv
    scale = 1.0 / float(d_qkv) ** 0.5
    tq = _row_tile(S, 512)
    tk = _row_tile(S, 512)
    grid = (B, S // tq, S // tk)
    return pl.pallas_call(
        functools.partial(_attn_kernel, scale=scale,
                          n_heads=n_heads, d_head=d_qkv),
        out_shape=jax.ShapeDtypeStruct((B, S, D), x_res.dtype),
        grid=grid,
        in_specs=[
            pl.BlockSpec((1, 1, tq, Hd), lambda b, qi, ki: (b, 0, qi, 0)),
            pl.BlockSpec((1, 1, tk, Hd), lambda b, qi, ki: (b, 1, ki, 0)),
            pl.BlockSpec((1, 1, tk, Hd), lambda b, qi, ki: (b, 2, ki, 0)),
            pl.BlockSpec((Hd, D), lambda b, qi, ki: (0, 0)),
            pl.BlockSpec((1, tq, D), lambda b, qi, ki: (b, qi, 0)),
        ],
        out_specs=pl.BlockSpec((1, tq, D), lambda b, qi, ki: (b, qi, 0)),
        scratch_shapes=[
            pltpu.VMEM((tq, n_heads), jnp.float32),   # running max per head
            pltpu.VMEM((tq, n_heads), jnp.float32),   # running denom per head
            pltpu.VMEM((tq, Hd), jnp.float32),        # context accumulator
        ],
        compiler_params=_cparams(("parallel", "parallel", "arbitrary")),
    )(qkv, qkv, qkv, w_o, x_res)


def _ffn_geglu_kernel(x_ref, g_ref, wa_ref, wb_ref, wo_ref, o_ref,
                      xn_sc, acc_sc, *, use_rms):
    f = pl.program_id(1)

    @pl.when(f == 0)
    def _():
        xn = _apply_norm(x_ref[...].astype(jnp.float32),
                         g_ref[...].astype(jnp.float32), use_rms)
        xn_sc[...] = xn.astype(xn_sc.dtype)
        acc_sc[...] = jnp.zeros_like(acc_sc)

    xn = xn_sc[...]
    a = jnp.dot(xn, wa_ref[...], preferred_element_type=jnp.float32)
    b = jnp.dot(xn, wb_ref[...], preferred_element_type=jnp.float32)
    # TODO(synk): tanh-approx GELU; PyTorch nn.GELU defaults to exact erf.
    hgl = (jax.nn.gelu(a, approximate=True) * b).astype(wo_ref.dtype)
    acc_sc[...] += jnp.dot(hgl, wo_ref[...], preferred_element_type=jnp.float32)

    @pl.when(f == pl.num_programs(1) - 1)
    def _():
        o_ref[...] = (acc_sc[...] +
                      x_ref[...].astype(jnp.float32)).astype(o_ref.dtype)


def _ffn_gelu_kernel(x_ref, g_ref, wa_ref, wo_ref, o_ref,
                     xn_sc, acc_sc, *, use_rms):
    f = pl.program_id(1)

    @pl.when(f == 0)
    def _():
        xn = _apply_norm(x_ref[...].astype(jnp.float32),
                         g_ref[...].astype(jnp.float32), use_rms)
        xn_sc[...] = xn.astype(xn_sc.dtype)
        acc_sc[...] = jnp.zeros_like(acc_sc)

    xn = xn_sc[...]
    a = jnp.dot(xn, wa_ref[...], preferred_element_type=jnp.float32)
    hgl = jax.nn.gelu(a, approximate=True).astype(wo_ref.dtype)
    acc_sc[...] += jnp.dot(hgl, wo_ref[...], preferred_element_type=jnp.float32)

    @pl.when(f == pl.num_programs(1) - 1)
    def _():
        o_ref[...] = (acc_sc[...] +
                      x_ref[...].astype(jnp.float32)).astype(o_ref.dtype)


def ln_ffn_geglu_out(x, gamma, w_a, w_b, w_out, use_rms):
    """Fused pre-LN + FFN-in + GEGLU + FFN-out + residual, K-tiled over F.

    x:[M,D] -> [M,D]; the [M,F] intermediate never touches HBM.
    """
    M, D = x.shape
    F = w_a.shape[1]
    tm = _row_tile(M, 512)
    tf = _lane_tile(F, 512)
    g2 = gamma.reshape(1, D)
    return pl.pallas_call(
        functools.partial(_ffn_geglu_kernel, use_rms=use_rms),
        out_shape=jax.ShapeDtypeStruct((M, D), x.dtype),
        grid=(M // tm, F // tf),
        in_specs=[
            pl.BlockSpec((tm, D), lambda i, f: (i, 0)),
            pl.BlockSpec((1, D), lambda i, f: (0, 0)),
            pl.BlockSpec((D, tf), lambda i, f: (0, f)),
            pl.BlockSpec((D, tf), lambda i, f: (0, f)),
            pl.BlockSpec((tf, D), lambda i, f: (f, 0)),
        ],
        out_specs=pl.BlockSpec((tm, D), lambda i, f: (i, 0)),
        scratch_shapes=[pltpu.VMEM((tm, D), x.dtype),
                        pltpu.VMEM((tm, D), jnp.float32)],
        compiler_params=_cparams(("parallel", "arbitrary")),
    )(x, g2, w_a, w_b, w_out)


def ln_ffn_gelu_out(x, gamma, w_a, w_out, use_rms):
    """Fused pre-LN + FFN-in + GELU + FFN-out + residual (non-GEGLU path)."""
    M, D = x.shape
    F = w_a.shape[1]
    tm = _row_tile(M, 512)
    tf = _lane_tile(F, 512)
    g2 = gamma.reshape(1, D)
    return pl.pallas_call(
        functools.partial(_ffn_gelu_kernel, use_rms=use_rms),
        out_shape=jax.ShapeDtypeStruct((M, D), x.dtype),
        grid=(M // tm, F // tf),
        in_specs=[
            pl.BlockSpec((tm, D), lambda i, f: (i, 0)),
            pl.BlockSpec((1, D), lambda i, f: (0, 0)),
            pl.BlockSpec((D, tf), lambda i, f: (0, f)),
            pl.BlockSpec((tf, D), lambda i, f: (f, 0)),
        ],
        out_specs=pl.BlockSpec((tm, D), lambda i, f: (i, 0)),
        scratch_shapes=[pltpu.VMEM((tm, D), x.dtype),
                        pltpu.VMEM((tm, D), jnp.float32)],
        compiler_params=_cparams(("parallel", "arbitrary")),
    )(x, g2, w_a, w_out)


# ------------------------------- model glue ----------------------------------

def init_params(key, *, vocab_size, max_seq_len, d_model, d_qkv, n_heads,
                ffn_hidden_size, ffn_geglu, n_layers, initializer_range,
                dtype=jnp.bfloat16):
    def nrm(k, shape):
        return (jax.random.normal(k, shape, jnp.float32)
                * initializer_range).astype(dtype)

    keys = jax.random.split(key, 2 + n_layers)
    D, F, H, dh = d_model, ffn_hidden_size, n_heads, d_qkv
    Hd = H * dh
    params = {
        "token_emb": nrm(keys[0], (vocab_size, D)),
        "pos_emb": nrm(keys[1], (max_seq_len, D)),
        "emb_norm_g": jnp.ones((D,), jnp.float32),
        "blocks": [],
    }
    for l in range(n_layers):
        bk = jax.random.split(keys[2 + l], 5)
        blk = {
            "ln1_g": jnp.ones((D,), jnp.float32),
            "ln2_g": jnp.ones((D,), jnp.float32),
            # q/k/v stacked on leading axis, heads packed along lanes
            "w_qkv": nrm(bk[0], (3, D, Hd)),
            "w_o": nrm(bk[1], (Hd, D)),
            "w_ffn_a": nrm(bk[2], (D, F)),
            "w_ffn_out": nrm(bk[4], (F, D)),
        }
        if ffn_geglu:
            blk["w_ffn_b"] = nrm(bk[3], (D, F))
        params["blocks"].append(blk)
    return params


def transformer_block(x, p, *, n_heads, d_qkv, use_rms, ffn_geglu):
    B, S, D = x.shape
    # attention sublayer: fused LN+QKV, flash attention fused with out-proj+residual
    qkv = ln_qkv_proj(x, p["ln1_g"], p["w_qkv"], use_rms)        # [B,3,S,H*dh]
    x1 = attention_block(qkv, p["w_o"], x, n_heads, d_qkv)       # [B,S,D]
    # FFN sublayer: single fused kernel (LN + FFN-in + act + FFN-out + residual)
    x1f = x1.reshape(B * S, D)
    if ffn_geglu:
        x2 = ln_ffn_geglu_out(x1f, p["ln2_g"], p["w_ffn_a"], p["w_ffn_b"],
                              p["w_ffn_out"], use_rms)
    else:
        x2 = ln_ffn_gelu_out(x1f, p["ln2_g"], p["w_ffn_a"],
                             p["w_ffn_out"], use_rms)
    return x2.reshape(B, S, D)


def bert_forward(X_ids, params, *, n_heads, d_qkv, use_rms, ffn_geglu):
    """Matches BERT.forward(X, targets=None, mask=None): returns hidden states."""
    B, S = X_ids.shape
    D = params["token_emb"].shape[1]
    # embedding gather stays in XLA (data-dependent gather); norm is a kernel
    emb = params["token_emb"][X_ids] + params["pos_emb"][:S][None, :, :]
    x = norm_rows(emb.reshape(B * S, D), params["emb_norm_g"], use_rms)
    x = x.reshape(B, S, D)
    # emb_dropout is identity at inference
    for bp in params["blocks"]:
        x = transformer_block(x, bp, n_heads=n_heads, d_qkv=d_qkv,
                              use_rms=use_rms, ffn_geglu=ffn_geglu)
    return x


# --------------------------------- driver ------------------------------------

if __name__ == "__main__":
    # small BERTConfig-equivalent
    vocab_size = 64
    n_layers = 2
    max_seq_len = 16
    d_model = 32
    d_qkv = 8
    n_heads = 4
    ffn_geglu = True
    ffn_hidden_size = 64
    use_rms = False
    initializer_range = 0.02

    B, S = 2, 8

    key = jax.random.PRNGKey(0)
    pkey, xkey = jax.random.split(key)
    params = init_params(
        pkey, vocab_size=vocab_size, max_seq_len=max_seq_len, d_model=d_model,
        d_qkv=d_qkv, n_heads=n_heads, ffn_hidden_size=ffn_hidden_size,
        ffn_geglu=ffn_geglu, n_layers=n_layers,
        initializer_range=initializer_range)

    X_ids = jax.random.randint(xkey, (B, S), 0, vocab_size, dtype=jnp.int32)

    out = bert_forward(X_ids, params, n_heads=n_heads, d_qkv=d_qkv,
                       use_rms=use_rms, ffn_geglu=ffn_geglu)
    out = jax.block_until_ready(out)
    assert out.shape == (B, S, d_model)
    assert bool(jnp.all(jnp.isfinite(out.astype(jnp.float32))))
    print("KERNEL_OK")
</pallas_src>

<mosaic_0001>
module attributes {stable_mosaic.version = 11 : i64} {
  func.func @_norm_kernel(%arg0: i32, %arg1: memref<16x32xbf16, #tpu.memory_space<vmem>>, %arg2: memref<1x32xf32, #tpu.memory_space<vmem>>, %arg3: memref<16x32xbf16, #tpu.memory_space<vmem>>) attributes {dimension_semantics = [#tpu.dimension_semantics<parallel>], iteration_bounds = array<i64: 1>, scalar_prefetch = 0 : i64, scratch_operands = 0 : i64, tpu.core_type = #tpu.core_type<tc>, window_params = [{transform_indices = @transform_0, window_bounds = array<i64: 16, 32>}, {pipeline_mode = #tpu.pipeline_mode<synchronous>, transform_indices = @transform_1, window_bounds = array<i64: 1, 32>}, {transform_indices = @transform_2, window_bounds = array<i64: 16, 32>}]} {
    %c0 = arith.constant 0 : index
    %c0_0 = arith.constant 0 : index
    %0 = vector.load %arg1[%c0, %c0_0] : memref<16x32xbf16, #tpu.memory_space<vmem>>, vector<16x32xbf16>
    %1 = arith.extf %0 : vector<16x32xbf16> to vector<16x32xf32>
    %c0_1 = arith.constant 0 : index
    %c0_2 = arith.constant 0 : index
    %2 = vector.load %arg2[%c0_1, %c0_2] : memref<1x32xf32, #tpu.memory_space<vmem>>, vector<1x32xf32>
    %cst = arith.constant dense<0.000000e+00> : vector<16xf32>
    %3 = vector.multi_reduction <add>, %1, %cst [1] : vector<16x32xf32> to vector<16xf32>
    %4 = vector.shape_cast %3 : vector<16xf32> to vector<16x1xf32>
    %cst_3 = arith.constant 3.200000e+01 : f32
    %5 = vector.broadcast %cst_3 : f32 to vector<16x1xf32>
    %6 = arith.divf %4, %5 : vector<16x1xf32>
    %7 = vector.broadcast %6 : vector<16x1xf32> to vector<16x32xf32>
    %8 = arith.subf %1, %7 : vector<16x32xf32>
    %9 = arith.mulf %8, %8 : vector<16x32xf32>
    %cst_4 = arith.constant dense<0.000000e+00> : vector<16xf32>
    %10 = vector.multi_reduction <add>, %9, %cst_4 [1] : vector<16x32xf32> to vector<16xf32>
    %11 = vector.shape_cast %10 : vector<16xf32> to vector<16x1xf32>
    %cst_5 = arith.constant 3.200000e+01 : f32
    %12 = vector.broadcast %cst_5 : f32 to vector<16x1xf32>
    %13 = arith.divf %11, %12 : vector<16x1xf32>
    %cst_6 = arith.constant 9.99999974E-6 : f32
    %14 = vector.broadcast %cst_6 : f32 to vector<16x1xf32>
    %15 = arith.addf %13, %14 : vector<16x1xf32>
    %16 = math.rsqrt %15 : vector<16x1xf32>
    %17 = vector.broadcast %16 : vector<16x1xf32> to vector<16x32xf32>
    %18 = arith.mulf %8, %17 : vector<16x32xf32>
    %19 = vector.broadcast %2 : vector<1x32xf32> to vector<16x32xf32>
    %20 = arith.mulf %18, %19 : vector<16x32xf32>
    %21 = arith.truncf %20 : vector<16x32xf32> to vector<16x32xbf16>
    %c0_7 = arith.constant 0 : index
    %c0_8 = arith.constant 0 : index
    %22 = vector.load %arg3[%c0_7, %c0_8] : memref<16x32xbf16, #tpu.memory_space<vmem>>, vector<16x32xbf16>
    tpu.vector_store %arg3[%c0_7, %c0_8], %21 {strides = array<i32>} : memref<16x32xbf16, #tpu.memory_space<vmem>>, vector<16x32xbf16>,
    return
  }
  func.func @transform_0(%arg0: i32) -> (i32, i32) {
    %c0_i32 = arith.constant 0 : i32
    %c0_i32_0 = arith.constant 0 : i32
    return %arg0, %c0_i32 : i32, i32
  }
  func.func @transform_1(%arg0: i32) -> (i32, i32) {
    %c0_i32 = arith.constant 0 : i32
    %c0_i32_0 = arith.constant 0 : i32
    %c0_i32_1 = arith.constant 0 : i32
    return %c0_i32, %c0_i32_0 : i32, i32
  }
  func.func @transform_2(%arg0: i32) -> (i32, i32) {
    %c0_i32 = arith.constant 0 : i32
    %c0_i32_0 = arith.constant 0 : i32
    return %arg0, %c0_i32 : i32, i32
  }
}

</mosaic_0001>

<bundles_post_ra>
// kernel: tpu_custom_call.1
= control target key start
LH: loop header
LB: loop body
LE: loop exit
PB: predicated region body
PF: predicated region fallthrough
CT: control target
= control target key end

     0   :  { %7 = vsyncpa [#allocation3], 0  ;;  %s216_s0 = inlined_call_operand.hbm [shape: bf16[16,32], index: 0, kind: input, shape index: {}]   ;;  %s217_s1 = inlined_call_operand.vmem [shape: f32[1,32], index: 1, kind: input, shape index: {}]   ;;  %s218_s2 = inlined_call_operand.hbm [shape: bf16[16,32], index: 2, kind: output, shape index: {}]  }
   0x1   :  { %8 = vsyncpa [#allocation4], 0  ;;  %s160_s9 = smov [#allocation2]   ;;  %s112_s13 = scalar_lea.hbm %s216_s0, 128 }
   0x2   :  { %s14_s10 = sshll.u32 %s160_s9, 4  ;;  %p113_p0 = scmp.ne.s32.totalorder %s216_s0, %s112_s13  ;;  %s15_s10 = int_to_ptr.vmem [resolvable:$true] %s14_s10 }
   0x3   :  { %p116_p1 = scmp.lt.u32.totalorder %s112_s13, %s216_s0 }
   0x5   :  { %p118_p2 = pnand %p116_p1, %p113_p0 }
   0x7   :  { %121 = shalt.err (!%p118_p2)
}
   0x8   :  { %s122_s18 = scalar_lea.vmem %s15_s10, 128  ;;  %p127_p4 = scmp.lt.s32.totalorder %s15_s10, %s15_s10 }
   0x9   :  { %p123_p3 = scmp.ne.s32.totalorder %s15_s10, %s122_s18  ;;  %p128_p5 = scmp.lt.s32.totalorder %s122_s18, %s122_s18 }
   0xb   :  { %p129_p6 = por %p128_p5, %p127_p4 }
   0xd   :  { %p130_p7 = pnand %p129_p6, %p123_p3 }
   0xf   :  { %133 = shalt.err (!%p130_p7)
}
  0x10   :  { %s161_s19 = smov 64   ;;  %s162_s20 = smov 4  }
  0x11   :  { %20 = dma.hbm_to_vmem [thread:$0]  %s216_s0, 128, %s15_s10, [#allocation3], %s161_s19, %s161_s19, %s162_s20  }
  0x12   :  { %156 = dma.done.wait [#allocation3], 128  }
  0x13   :  { %157 = vsyncadd [#allocation3], 4294967168  ;;  %v101_v0 = vld [vmem:[#allocation2] sm:$0xff]   ;;  %vm31_vm0 = vcmask 261120   ;;  %vm75_vm1 = vcmask 257024   ;;  %s163_s24 = smov [#allocation5]  }
  0x14   :  { %v102_v1 = vunpack.c.l.bf16 %v101_v0  ;;  %v103_v2 = vunpack.c.h.bf16 %v101_v0  ;;  %v95_v22 = vld [vmem:[%s217_s1] ss:$0 sm:$0xff]  ;;  %s83_s25 = sshll.u32 %s163_s24, 4  ;;  %s84_s25 = int_to_ptr.vmem [resolvable:$true] %s83_s25 }
  0x15   :  { %s134_s26 = scalar_lea.vmem %s84_s25, 128  ;;  %p139_p9 = scmp.lt.s32.totalorder %s84_s25, %s84_s25 }
  0x16   :  { %v32_v3 = vsel %vm31_vm0, %v102_v1, 0.0  ;;  %v35_v4 = vsel %vm31_vm0, %v103_v2, 0.0  ;;  %p135_p8 = scmp.ne.s32.totalorder %s84_s25, %s134_s26  ;;  %p140_p10 = scmp.lt.s32.totalorder %s134_s26, %s134_s26 }
  0x17   :  { %33 = vadd.xlane.f32.xlu0 %v32_v3 }
  0x18   :  { %p141_p11 = por %p140_p10, %p139_p9 }
  0x1a   :  { %p142_p12 = pnand %p141_p11, %p135_p8 }
  0x1b   :  { %36 = vadd.xlane.f32.xlu0 %v35_v4 }
  0xa4   :  { %v34_v5 = vpop.xlane.xlu0 %33 }
  0xa5   :  { %v39_v6 = vmul.f32 0.03125, %v34_v5 }
  0xa7   :  { %v41_v7 = vsub.f32 %v102_v1, %v39_v6 }
  0xa8   :  { %v37_v8 = vpop.xlane.xlu0 %36 }
  0xa9   :  { %v40_v9 = vmul.f32 0.03125, %v37_v8  ;;  %v43_v10 = vmul.f32 %v41_v7, %v41_v7 }
  0xab   :  { %v42_v11 = vsub.f32 %v103_v2, %v40_v9  ;;  %v45_v12 = vsel %vm31_vm0, %v43_v10, 0.0 }
  0xac   :  { %46 = vadd.xlane.f32.xlu1 %v45_v12 }
  0xad   :  { %v44_v13 = vmul.f32 %v42_v11, %v42_v11 }
  0xaf   :  { %v48_v14 = vsel %vm31_vm0, %v44_v13, 0.0 }
  0xb0   :  { %49 = vadd.xlane.f32.xlu1 %v48_v14 }
 0x139   :  { %v47_v15 = vpop.xlane.xlu1 %46 }
 0x13a   :  { %v51_v16 = vmul.f32 0.03125, %v47_v15 }
 0x13c   :  { %v53_v17 = vadd.f32 1e-05, %v51_v16 }
 0x13d   :  { %v50_v18 = vpop.xlane.xlu1 %49 }
 0x13e   :  { %108 = vrsqrt.f32 %v53_v17  ;;  %v52_v19 = vmul.f32 0.03125, %v50_v18 }
 0x140   :  { %v54_v20 = vadd.f32 1e-05, %v52_v19 }
 0x142   :  { %110 = vrsqrt.f32 %v54_v20 }
 0x148   :  { %v109_v21 = vpop.eup %108 }
 0x149   :  { %v57_v23 = vmul.f32 %v109_v21, %v41_v7 }
 0x14b   :  { %v65_v24 = vmul.f32 %v95_v22, %v57_v23 }
 0x14c   :  { %v111_v25 = vpop.eup %110 }
 0x14d   :  { %v58_v26 = vmul.f32 %v111_v25, %v42_v11  ;;  %v98_v27 = vpack.c.bf16 %v65_v24, %v65_v24 }
 0x14f   :  { %v66_v28 = vmul.f32 %v95_v22, %v58_v26  ;;  %76 = vst.msk [vmem:[#allocation5] sm:$0xf] %vm75_vm1, %v98_v27 }
 0x151   :  { %v99_v29 = vpack.c.bf16 %v66_v28, %v66_v28 }
 0x153   :  { %77 = vst.msk [vmem:[#allocation5 + $0x4] sm:$0xf] %vm75_vm1, %v99_v29 }
 0x154   :  { %145 = shalt.err (!%p142_p12)
}
 0x155   :  { %s146_s28 = scalar_lea.hbm %s218_s2, 128 }
 0x156   :  { %p147_p13 = scmp.ne.s32.totalorder %s218_s2, %s146_s28  ;;  %p150_p0 = scmp.lt.u32.totalorder %s146_s28, %s218_s2 }
 0x158   :  { %p152_p1 = pnand %p150_p0, %p147_p13 }
 0x15a   :  { %155 = shalt.err (!%p152_p1)
}
 0x15b   :  { %89 = dma.vmem_to_hbm [thread:$0]  %s84_s25, 128, %s218_s2, [#allocation4], %s161_s19, %s161_s19, %s162_s20  }
 0x15c   :  { %158 = dma.done.wait [#allocation4], 128  }
 0x15d   :  { %159 = vsyncadd [#allocation4], 4294967168 }
 0x15e   :  { %93 = vsyncpa [#allocation3], 1 }
 0x15f   :  { %94 = vsyncpa [#allocation4], 1 }

</bundles_post_ra>
